<compile_context>
chip_gen: v5e
topology: v5e:2x2
jax: 0.10.0
libtpu: 0.0.40
codegen_flags: <defaults>
</compile_context>

<pallas_src>
import math
from functools import partial

import jax
import jax.numpy as jnp
from jax.experimental import pallas as pl
from jax.experimental.pallas import tpu as pltpu


# ----------------------- generation-aware kernel budgets ---------------------

def _vmem_capacity_bytes():
    """Physical VMEM per TensorCore (128 MiB on v5e/v6e, 64 MiB on v7x)."""
    try:
        info = pltpu.get_tpu_info()
        for attr in ("vmem_capacity_bytes", "vmem_size_bytes", "vmem_bytes"):
            v = getattr(info, attr, None)
            if v:
                return int(v)
    except Exception:
        pass
    return 64 * 1024 * 1024                    # conservative default (v7x per-TC)


_VMEM_CAP = _vmem_capacity_bytes()
if _VMEM_CAP >= 100 * 1024 * 1024:             # v5e / v6e: 128 MiB VMEM
    MAX_ROW_TILE = 512                         # multiple of 128, ~85% HBM roofline
    VMEM_LIMIT = 96 * 1024 * 1024
else:                                          # v7x: 64 MiB per TensorCore
    MAX_ROW_TILE = 256
    VMEM_LIMIT = 40 * 1024 * 1024

_ROW_PARAMS = pltpu.CompilerParams(dimension_semantics=("parallel",),
                                   vmem_limit_bytes=VMEM_LIMIT)


# ------------------- single-buffered resident-block support ------------------

_SINGLE_BUFFER_RESIDENT = None


def _probe_single_buffer():
    """Check whether pipeline_mode=pl.Buffered(1) is accepted by this JAX build
    (single-buffered resident weights -> half the weight VMEM)."""
    def _copy(x_ref, o_ref):
        o_ref[...] = x_ref[...]
    try:
        spec = pl.BlockSpec((8, 128), lambda i: (0, 0), pipeline_mode=pl.Buffered(1))
        out = pl.pallas_call(
            _copy,
            out_shape=jax.ShapeDtypeStruct((16, 128), jnp.float32),
            grid=(2,),
            in_specs=[spec],
            out_specs=pl.BlockSpec((8, 128), lambda i: (i, 0)),
        )(jnp.ones((8, 128), jnp.float32))
        jax.block_until_ready(out)
        return True
    except Exception:
        return False


def _single_buffer_ok():
    global _SINGLE_BUFFER_RESIDENT
    if _SINGLE_BUFFER_RESIDENT is None:
        _SINGLE_BUFFER_RESIDENT = _probe_single_buffer()
    return _SINGLE_BUFFER_RESIDENT


def _resident_spec(shape):
    """BlockSpec for weights / packed vectors: constant block index (stays resident
    in VMEM across the row grid), single-buffered when supported."""
    if _single_buffer_ok():
        return pl.BlockSpec(shape, lambda i: (0, 0), pipeline_mode=pl.Buffered(1))
    return pl.BlockSpec(shape, lambda i: (0, 0))


# ----------------------------- in-kernel helpers ----------------------------

def _mm(x, w):
    """MXU matmul: bf16 operands, f32 accumulation."""
    return jnp.dot(x.astype(jnp.bfloat16), w.astype(jnp.bfloat16),
                   preferred_element_type=jnp.float32)


def _ln(x, g, b, eps):
    """LayerNorm over last dim, statistics in f32.  g/b are (1, D)."""
    mu = jnp.mean(x, axis=-1, keepdims=True)
    var = jnp.mean(jnp.square(x - mu), axis=-1, keepdims=True)
    return (x - mu) * jax.lax.rsqrt(var + eps) * g + b


def _gelu(x):
    # tanh approximation of GELU (exact for PreSumm's decoder FFN)
    return 0.5 * x * (1.0 + jnp.tanh(0.7978845608028654 * (x + 0.044715 * x * x * x)))


# ----------------------------- row-wise kernels ------------------------------
# All row kernels: tile over the M = B*seq row axis; weights / packed vectors are
# resident (constant-index, single-buffered) VMEM blocks.  Packed vector layouts
# are documented per kernel.

def _linear_kernel(x_ref, w_ref, b_ref, o_ref):
    o_ref[...] = (_mm(x_ref[...], w_ref[...]) + b_ref[...]).astype(o_ref.dtype)


def _linear_res_kernel(x_ref, r_ref, w_ref, b_ref, o_ref):
    y = _mm(x_ref[...], w_ref[...]) + b_ref[...] + r_ref[...].astype(jnp.float32)
    o_ref[...] = y.astype(o_ref.dtype)


def _linear_res_postln_kernel(x_ref, r_ref, w_ref, v_ref, o_ref, *, eps):
    # v_ref: (3, D) = [bias; gamma; beta]
    v = v_ref[...]
    y = _mm(x_ref[...], w_ref[...]) + v[0:1] + r_ref[...].astype(jnp.float32)
    o_ref[...] = _ln(y, v[1:2], v[2:3], eps).astype(o_ref.dtype)


def _preln_linear_kernel(x_ref, v_ref, w_ref, b_ref, o_ref, *, eps):
    # v_ref: (2, D) = [gamma; beta]
    v = v_ref[...]
    xn = _ln(x_ref[...].astype(jnp.float32), v[0:1], v[1:2], eps)
    o_ref[...] = (_mm(xn, w_ref[...]) + b_ref[...]).astype(o_ref.dtype)


def _ffn_postln_kernel(x_ref, w1_ref, b1_ref, w2_ref, v_ref, o_ref, *, eps):
    # v_ref: (3, D) = [b2; gamma; beta]
    x = x_ref[...]
    v = v_ref[...]
    h = _gelu(_mm(x, w1_ref[...]) + b1_ref[...])
    y = _mm(h, w2_ref[...]) + v[0:1] + x.astype(jnp.float32)
    o_ref[...] = _ln(y, v[1:2], v[2:3], eps).astype(o_ref.dtype)


def _preln_ffn_res_kernel(x_ref, v_ref, w1_ref, b1_ref, w2_ref, o_ref, *, eps):
    # v_ref: (3, D) = [gamma; beta; b2]
    x = x_ref[...]
    v = v_ref[...]
    xn = _ln(x.astype(jnp.float32), v[0:1], v[1:2], eps)
    h = _gelu(_mm(xn, w1_ref[...]) + b1_ref[...])
    o_ref[...] = (_mm(h, w2_ref[...]) + v[2:3] + x.astype(jnp.float32)).astype(o_ref.dtype)


def _layernorm_kernel(x_ref, v_ref, o_ref, *, eps):
    # v_ref: (2, D) = [gamma; beta]
    v = v_ref[...]
    o_ref[...] = _ln(x_ref[...].astype(jnp.float32), v[0:1], v[1:2], eps).astype(o_ref.dtype)


# --------------------------- row-kernel dispatcher ---------------------------

def _round_up(x, m):
    return ((x + m - 1) // m) * m


def _row_tile(M):
    """Row tile: multiple of 8, as large as the budget allows, preferring an exact
    divisor of the 8-padded row count (minimal padded work)."""
    m8 = _round_up(M, 8)
    if m8 <= MAX_ROW_TILE:
        return m8
    for t in range(MAX_ROW_TILE, MAX_ROW_TILE // 2 - 1, -8):
        if m8 % t == 0:
            return t
    return MAX_ROW_TILE            # tail handled via padding + output slice


def _rows_call(kernel, x2d, row_arrays, resident_arrays, out_n,
               out_dtype=jnp.bfloat16):
    """Tile x2d (M, K) (and row_arrays) over rows; resident_arrays (weights / packed
    bias+LN vectors) use a constant block index so they stay in VMEM.  M is padded to
    the tile and the output sliced back."""
    M = x2d.shape[0]
    tm = _row_tile(M)
    m_pad = _round_up(M, tm)

    def pad(a):
        return a if a.shape[0] == m_pad else jnp.pad(a, ((0, m_pad - a.shape[0]), (0, 0)))

    in_specs = [pl.BlockSpec((tm, x2d.shape[1]), lambda i: (i, 0))]
    args = [pad(x2d)]
    for a in row_arrays:
        in_specs.append(pl.BlockSpec((tm, a.shape[1]), lambda i: (i, 0)))
        args.append(pad(a))
    for a in resident_arrays:
        a2 = a if a.ndim == 2 else a.reshape(1, -1)
        in_specs.append(_resident_spec(a2.shape))
        args.append(a2)

    out = pl.pallas_call(
        kernel,
        out_shape=jax.ShapeDtypeStruct((m_pad, out_n), out_dtype),
        grid=(m_pad // tm,),
        in_specs=in_specs,
        out_specs=pl.BlockSpec((tm, out_n), lambda i: (i, 0)),
        compiler_params=_ROW_PARAMS,
    )(*args)
    return out if m_pad == M else out[:M]


def linear(x, w, b):
    return _rows_call(_linear_kernel, x, [], [w, b], w.shape[1])


def linear_res(x, w, b, res):
    return _rows_call(_linear_res_kernel, x, [res], [w, b], w.shape[1])


def linear_res_postln(x, w, vec3, res, eps):
    return _rows_call(partial(_linear_res_postln_kernel, eps=eps),
                      x, [res], [w, vec3], w.shape[1])


def preln_linear(x, ln_vec, eps, w, b):
    return _rows_call(partial(_preln_linear_kernel, eps=eps),
                      x, [], [ln_vec, w, b], w.shape[1])


def ffn_postln(x, w1, b1, w2, vec3, eps):
    return _rows_call(partial(_ffn_postln_kernel, eps=eps),
                      x, [], [w1, b1, w2, vec3], w2.shape[1])


def preln_ffn_res(x, vec3, eps, w1, b1, w2):
    return _rows_call(partial(_preln_ffn_res_kernel, eps=eps),
                      x, [], [vec3, w1, b1, w2], w2.shape[1])


def layernorm(x, ln_vec, eps, out_dtype=jnp.bfloat16):
    return _rows_call(partial(_layernorm_kernel, eps=eps),
                      x, [], [ln_vec], x.shape[1], out_dtype=out_dtype)


# ------------------------------ attention kernels ----------------------------

def _head_attend(qh, kh, vh, bias, scale):
    """One head: qh (Tq, dh), kh/vh (Tk, dh) bf16; bias (1|Tq, Tk) f32."""
    s = jax.lax.dot_general(qh, kh, (((1,), (1,)), ((), ())),
                            preferred_element_type=jnp.float32) * scale + bias
    s = s - jnp.max(s, axis=-1, keepdims=True)
    p = jnp.exp(s)                                            # f32 softmax
    p = p * pl.reciprocal(jnp.sum(p, axis=-1, keepdims=True), approx=True)
    return jnp.dot(p.astype(jnp.bfloat16), vh, preferred_element_type=jnp.float32)


def _self_attn_kernel(kmask_ref, qkv_ref, o_ref, *, heads, dh, scale, causal, neg):
    """One batch element; q|k|v packed along the last dim of qkv_ref (1, T, 3*H*dh).
    Heads are split with static column slices; output is a lane-dense (1, T, D) slab."""
    D = heads * dh
    Tq = o_ref.shape[1]
    Tk = kmask_ref.shape[2]
    bias = (1.0 - kmask_ref[0]) * neg                         # (1, Tk) key-padding bias
    if causal:
        ri = jax.lax.broadcasted_iota(jnp.int32, (Tq, Tk), 0)
        ci = jax.lax.broadcasted_iota(jnp.int32, (Tq, Tk), 1)
        bias = bias + jnp.where(ci > ri, neg, 0.0)            # (Tq, Tk)
    for h in range(heads):                                    # static unroll over heads
        lo = h * dh
        qh = qkv_ref[0, :, lo:lo + dh].astype(jnp.bfloat16)
        kh = qkv_ref[0, :, D + lo:D + lo + dh].astype(jnp.bfloat16)
        vh = qkv_ref[0, :, 2 * D + lo:2 * D + lo + dh].astype(jnp.bfloat16)
        o_ref[0, :, lo:lo + dh] = _head_attend(qh, kh, vh, bias, scale).astype(o_ref.dtype)


def _cross_attn_kernel(kmask_ref, q_ref, kv_ref, o_ref, *, heads, dh, scale, neg):
    """One batch element; k|v packed along the last dim of kv_ref (1, Tk, 2*H*dh)."""
    D = heads * dh
    bias = (1.0 - kmask_ref[0]) * neg                         # (1, Tk)
    for h in range(heads):
        lo = h * dh
        qh = q_ref[0, :, lo:lo + dh].astype(jnp.bfloat16)
        kh = kv_ref[0, :, lo:lo + dh].astype(jnp.bfloat16)
        vh = kv_ref[0, :, D + lo:D + lo + dh].astype(jnp.bfloat16)
        o_ref[0, :, lo:lo + dh] = _head_attend(qh, kh, vh, bias, scale).astype(o_ref.dtype)


def self_attention(qkv, key_keep, scale, *, heads, causal, neg):
    """qkv: (B, T, 3*D) packed q|k|v (bf16); key_keep: (B, T), 1 = real token."""
    B, T, threeD = qkv.shape
    D = threeD // 3
    dh = D // heads
    kmask = key_keep.astype(jnp.float32).reshape(B, 1, T)
    return pl.pallas_call(
        partial(_self_attn_kernel, heads=heads, dh=dh, scale=scale,
                causal=causal, neg=neg),
        out_shape=jax.ShapeDtypeStruct((B, T, D), jnp.bfloat16),
        grid=(B,),
        in_specs=[pl.BlockSpec((1, 1, T), lambda b: (b, 0, 0)),
                  pl.BlockSpec((1, T, threeD), lambda b: (b, 0, 0))],
        out_specs=pl.BlockSpec((1, T, D), lambda b: (b, 0, 0)),
        compiler_params=_ROW_PARAMS,
    )(kmask, qkv)


def cross_attention(q, kv, key_keep, scale, *, heads, neg):
    """q: (B, Tq, D); kv: (B, Tk, 2*D) packed k|v; key_keep: (B, Tk)."""
    B, Tq, D = q.shape
    Tk = kv.shape[1]
    dh = D // heads
    kmask = key_keep.astype(jnp.float32).reshape(B, 1, Tk)
    return pl.pallas_call(
        partial(_cross_attn_kernel, heads=heads, dh=dh, scale=scale, neg=neg),
        out_shape=jax.ShapeDtypeStruct((B, Tq, D), jnp.bfloat16),
        grid=(B,),
        in_specs=[pl.BlockSpec((1, 1, Tk), lambda b: (b, 0, 0)),
                  pl.BlockSpec((1, Tq, D), lambda b: (b, 0, 0)),
                  pl.BlockSpec((1, Tk, 2 * D), lambda b: (b, 0, 0))],
        out_specs=pl.BlockSpec((1, Tq, D), lambda b: (b, 0, 0)),
        compiler_params=_ROW_PARAMS,
    )(kmask, q, kv)


# ----------------------------- model plumbing -------------------------------

def bert_forward(p, src, segs, mask_src, cfg):
    """BERT-base style encoder (post-LN, GELU), dropout = eval no-op."""
    B, S = src.shape
    D, H = cfg["hidden"], cfg["heads"]
    dh = D // H
    scale = 1.0 / math.sqrt(dh)

    emb = p["word_emb"][src] + p["pos_emb"][:S][None, :, :] + p["type_emb"][segs]
    h = layernorm(emb.reshape(B * S, D), p["emb_ln_vec"], 1e-12)      # (B*S, D) bf16
    src_keep = mask_src.astype(jnp.float32)                           # (B, S)

    for lp in p["enc_layers"]:
        # fused QKV projection -> packed (B, S, 3D) slab fed straight to attention
        qkv = linear(h, lp["wqkv"], lp["bqkv"])
        ctx = self_attention(qkv.reshape(B, S, 3 * D), src_keep, scale,
                             heads=H, causal=False, neg=-10000.0)     # (B, S, D)
        # output projection + residual + post-LN fused
        h = linear_res_postln(ctx.reshape(B * S, D), lp["wo"], lp["attn_vec"], h, 1e-12)
        # FFN + residual + post-LN fused
        h = ffn_postln(h, lp["w1"], lp["b1"], lp["w2"], lp["ffn_vec"], 1e-12)
    return h.reshape(B, S, D)                                         # bf16


def _sinusoidal_pe(T, D):
    pos = jnp.arange(T, dtype=jnp.float32)[:, None]
    div = jnp.exp(jnp.arange(0, D, 2, dtype=jnp.float32) * -(math.log(10000.0) / D))
    pe = jnp.zeros((T, D), jnp.float32)
    pe = pe.at[:, 0::2].set(jnp.sin(pos * div))
    pe = pe.at[:, 1::2].set(jnp.cos(pos * div))
    return pe


def decoder_forward(p, tgt_in, src, memory, cfg):
    """PreSumm TransformerDecoder (pre-LN layers + final LN), dropout = eval no-op."""
    B, T = tgt_in.shape
    D, H = cfg["hidden"], cfg["heads"]
    dh = D // H
    scale = 1.0 / math.sqrt(dh)
    S = memory.shape[1]

    x = (p["tgt_emb"][tgt_in] * math.sqrt(D) + _sinusoidal_pe(T, D)[None, :, :]
         ).astype(jnp.bfloat16).reshape(B * T, D)
    tgt_keep = (tgt_in != 0).astype(jnp.float32)          # (B, T), padding_idx = 0
    src_keep = (src != 0).astype(jnp.float32)             # (B, S)
    mem2 = memory.reshape(B * S, D)

    for lp in p["dec_layers"]:
        # --- self-attention (pre-LN fused into fused QKV projection) ---
        qkv = preln_linear(x, lp["ln1_vec"], 1e-6, lp["self_wqkv"], lp["self_bqkv"])
        ctx = self_attention(qkv.reshape(B, T, 3 * D), tgt_keep, scale,
                             heads=H, causal=True, neg=-1e9)
        query = linear_res(ctx.reshape(B * T, D), lp["self_wo"], lp["self_bo"], x)

        # --- cross-attention (pre-LN fused into Q projection; fused KV) ---
        qn = preln_linear(query, lp["ln2_vec"], 1e-6, lp["cross_wq"], lp["cross_bq"])
        kv = linear(mem2, lp["cross_wkv"], lp["cross_bkv"])
        cctx = cross_attention(qn.reshape(B, T, D), kv.reshape(B, S, 2 * D),
                               src_keep, scale, heads=H, neg=-1e9)
        mid = linear_res(cctx.reshape(B * T, D), lp["cross_wo"], lp["cross_bo"], query)

        # --- PositionwiseFeedForward: LN -> W1 -> GELU -> W2 -> +residual (one kernel)
        x = preln_ffn_res(mid, lp["ff_vec"], 1e-6, lp["w1"], lp["b1"], lp["w2"])

    out = layernorm(x, p["final_ln_vec"], 1e-6, out_dtype=jnp.float32)
    return out.reshape(B, T, D)


def abs_summarizer_forward(params, src, tgt, segs, clss, mask_src, mask_tgt,
                           mask_cls, cfg):
    top_vec = bert_forward(params["bert"], src, segs, mask_src, cfg)
    dec_out = decoder_forward(params["decoder"], tgt[:, :-1], src, top_vec, cfg)
    # NOTE: the generator (Linear + LogSoftmax) is built in __init__ but NOT applied
    # in AbsSummarizer.forward, so it is not invoked here either.
    return dec_out, None


# ----------------------------- parameter init -------------------------------

def _normal(key, shape, std=0.02):
    return std * jax.random.normal(key, shape, dtype=jnp.float32)


def init_params(key, cfg):
    """Natural f32 parameter layout matching the module's no-checkpoint init."""
    V, D, F = cfg["vocab"], cfg["hidden"], cfg["ff"]
    keys = iter(jax.random.split(key, 1024))
    nk = lambda: next(keys)
    zeros = lambda n: jnp.zeros((n,), jnp.float32)
    ones = lambda n: jnp.ones((n,), jnp.float32)

    def enc_layer():
        return dict(wqkv=_normal(nk(), (D, 3 * D)), bqkv=zeros(3 * D),
                    wo=_normal(nk(), (D, D)), bo=zeros(D),
                    attn_ln_g=ones(D), attn_ln_b=zeros(D),
                    w1=_normal(nk(), (D, F)), b1=zeros(F),
                    w2=_normal(nk(), (F, D)), b2=zeros(D),
                    ffn_ln_g=ones(D), ffn_ln_b=zeros(D))

    def dec_layer():
        return dict(ln1_g=ones(D), ln1_b=zeros(D),
                    self_wqkv=_normal(nk(), (D, 3 * D)), self_bqkv=zeros(3 * D),
                    self_wo=_normal(nk(), (D, D)), self_bo=zeros(D),
                    ln2_g=ones(D), ln2_b=zeros(D),
                    cross_wq=_normal(nk(), (D, D)), cross_bq=zeros(D),
                    cross_wkv=_normal(nk(), (D, 2 * D)), cross_bkv=zeros(2 * D),
                    cross_wo=_normal(nk(), (D, D)), cross_bo=zeros(D),
                    ff_ln_g=ones(D), ff_ln_b=zeros(D),
                    w1=_normal(nk(), (D, F)), b1=zeros(F),
                    w2=_normal(nk(), (F, D)), b2=zeros(D))

    bert = dict(word_emb=_normal(nk(), (V, D)),
                pos_emb=_normal(nk(), (cfg["max_pos"], D)),
                type_emb=_normal(nk(), (2, D)),
                emb_ln_g=ones(D), emb_ln_b=zeros(D),
                enc_layers=[enc_layer() for _ in range(cfg["enc_layers"])])

    decoder = dict(tgt_emb=_normal(nk(), (V, D)).at[0].set(0.0),   # padding_idx = 0
                   final_ln_g=ones(D), final_ln_b=zeros(D),
                   dec_layers=[dec_layer() for _ in range(cfg["dec_layers"])])
    return dict(bert=bert, decoder=decoder)


def prepare_params(p):
    """One-time repack for the Pallas forward: matmul weights -> bf16 (read straight
    from HBM in bf16, no per-forward convert), bias/LN vectors packed into single
    resident (k, D) blocks, standalone biases reshaped to (1, N)."""
    bf = lambda w: w.astype(jnp.bfloat16)
    row = lambda v: v.reshape(1, -1)
    stack = lambda *vs: jnp.stack(vs, axis=0)

    b = p["bert"]
    bert = dict(
        word_emb=b["word_emb"], pos_emb=b["pos_emb"], type_emb=b["type_emb"],
        emb_ln_vec=stack(b["emb_ln_g"], b["emb_ln_b"]),
        enc_layers=[dict(
            wqkv=bf(l["wqkv"]), bqkv=row(l["bqkv"]),
            wo=bf(l["wo"]),
            attn_vec=stack(l["bo"], l["attn_ln_g"], l["attn_ln_b"]),
            w1=bf(l["w1"]), b1=row(l["b1"]),
            w2=bf(l["w2"]),
            ffn_vec=stack(l["b2"], l["ffn_ln_g"], l["ffn_ln_b"]),
        ) for l in b["enc_layers"]],
    )

    d = p["decoder"]
    decoder = dict(
        tgt_emb=d["tgt_emb"],
        final_ln_vec=stack(d["final_ln_g"], d["final_ln_b"]),
        dec_layers=[dict(
            ln1_vec=stack(l["ln1_g"], l["ln1_b"]),
            self_wqkv=bf(l["self_wqkv"]), self_bqkv=row(l["self_bqkv"]),
            self_wo=bf(l["self_wo"]), self_bo=row(l["self_bo"]),
            ln2_vec=stack(l["ln2_g"], l["ln2_b"]),
            cross_wq=bf(l["cross_wq"]), cross_bq=row(l["cross_bq"]),
            cross_wkv=bf(l["cross_wkv"]), cross_bkv=row(l["cross_bkv"]),
            cross_wo=bf(l["cross_wo"]), cross_bo=row(l["cross_bo"]),
            ff_vec=stack(l["ff_ln_g"], l["ff_ln_b"], l["b2"]),
            w1=bf(l["w1"]), b1=row(l["b1"]), w2=bf(l["w2"]),
        ) for l in d["dec_layers"]],
    )
    return dict(bert=bert, decoder=decoder)


# ----------------------------------- main -----------------------------------

if __name__ == "__main__":
    cfg = dict(vocab=64, hidden=32, heads=4, ff=64,
               enc_layers=2, dec_layers=2, max_pos=64)
    B, S, T = 2, 16, 8

    key = jax.random.PRNGKey(0)
    k_par, k_src, k_tgt = jax.random.split(key, 3)
    params = prepare_params(init_params(k_par, cfg))

    src = jax.random.randint(k_src, (B, S), 1, cfg["vocab"], dtype=jnp.int32)
    src = src.at[:, -2:].set(0)                      # pad last two source positions
    mask_src = (src != 0).astype(jnp.float32)
    segs = jnp.concatenate([jnp.zeros((B, S // 2), jnp.int32),
                            jnp.ones((B, S // 2), jnp.int32)], axis=1)
    tgt = jax.random.randint(k_tgt, (B, T), 1, cfg["vocab"], dtype=jnp.int32)
    mask_tgt = jnp.ones((B, T), jnp.float32)
    clss = jnp.zeros((B, 1), jnp.int32)
    mask_cls = jnp.ones((B, 1), jnp.float32)

    dec_out, _ = abs_summarizer_forward(params, src, tgt, segs, clss,
                                        mask_src, mask_tgt, mask_cls, cfg)
    dec_out = jax.block_until_ready(dec_out)

    assert dec_out.shape == (B, T - 1, cfg["hidden"]), dec_out.shape
    assert bool(jnp.all(jnp.isfinite(dec_out)))
    print("KERNEL_OK")
</pallas_src>

<mosaic_0001>
module attributes {stable_mosaic.version = 11 : i64} {
  func.func @_copy(%arg0: i32, %arg1: memref<8x128xf32, #tpu.memory_space<vmem>>, %arg2: memref<8x128xf32, #tpu.memory_space<vmem>>) attributes {dimension_semantics = [#tpu.dimension_semantics<arbitrary>], iteration_bounds = array<i64: 2>, scalar_prefetch = 0 : i64, scratch_operands = 0 : i64, tpu.core_type = #tpu.core_type<tc>, window_params = [{pipeline_mode = #tpu.pipeline_mode<synchronous>, transform_indices = @transform_0, window_bounds = array<i64: 8, 128>}, {transform_indices = @transform_1, window_bounds = array<i64: 8, 128>}]} {
    %c0 = arith.constant 0 : index
    %c0_0 = arith.constant 0 : index
    %0 = vector.load %arg1[%c0, %c0_0] : memref<8x128xf32, #tpu.memory_space<vmem>>, vector<8x128xf32>
    %c0_1 = arith.constant 0 : index
    %c0_2 = arith.constant 0 : index
    %1 = vector.load %arg2[%c0_1, %c0_2] : memref<8x128xf32, #tpu.memory_space<vmem>>, vector<8x128xf32>
    tpu.vector_store %arg2[%c0_1, %c0_2], %0 {strides = array<i32>} : memref<8x128xf32, #tpu.memory_space<vmem>>, vector<8x128xf32>,
    return
  }
  func.func @transform_0(%arg0: i32) -> (i32, i32) {
    %c0_i32 = arith.constant 0 : i32
    %c0_i32_0 = arith.constant 0 : i32
    %c0_i32_1 = arith.constant 0 : i32
    return %c0_i32, %c0_i32_0 : i32, i32
  }
  func.func @transform_1(%arg0: i32) -> (i32, i32) {
    %c0_i32 = arith.constant 0 : i32
    %c0_i32_0 = arith.constant 0 : i32
    return %arg0, %c0_i32 : i32, i32
  }
}

module attributes {stable_mosaic.version = 11 : i64} {
  func.func @_layernorm_kernel(%arg0: i32, %arg1: memref<32x32xf32, #tpu.memory_space<vmem>>, %arg2: memref<2x32xf32, #tpu.memory_space<vmem>>, %arg3: memref<32x32xbf16, #tpu.memory_space<vmem>>) attributes {dimension_semantics = [#tpu.dimension_semantics<parallel>], iteration_bounds = array<i64: 1>, scalar_prefetch = 0 : i64, scratch_operands = 0 : i64, tpu.core_type = #tpu.core_type<tc>, window_params = [{transform_indices = @transform_0, window_bounds = array<i64: 32, 32>}, {pipeline_mode = #tpu.pipeline_mode<synchronous>, transform_indices = @transform_1, window_bounds = array<i64: 2, 32>}, {transform_indices = @transform_2, window_bounds = array<i64: 32, 32>}]} {
    %c0 = arith.constant 0 : index
    %c0_0 = arith.constant 0 : index
    %0 = vector.load %arg2[%c0, %c0_0] : memref<2x32xf32, #tpu.memory_space<vmem>>, vector<2x32xf32>
    %c0_1 = arith.constant 0 : index
    %c0_2 = arith.constant 0 : index
    %1 = vector.load %arg1[%c0_1, %c0_2] : memref<32x32xf32, #tpu.memory_space<vmem>>, vector<32x32xf32>
    %2 = vector.extract_strided_slice %0 {offsets = [0, 0], sizes = [1, 32], strides = [1, 1]} : vector<2x32xf32> to vector<1x32xf32>
    %3 = vector.extract_strided_slice %0 {offsets = [1, 0], sizes = [1, 32], strides = [1, 1]} : vector<2x32xf32> to vector<1x32xf32>
    %cst = arith.constant dense<0.000000e+00> : vector<32xf32>
    %4 = vector.multi_reduction <add>, %1, %cst [1] : vector<32x32xf32> to vector<32xf32>
    %5 = vector.shape_cast %4 : vector<32xf32> to vector<32x1xf32>
    %cst_3 = arith.constant 3.200000e+01 : f32
    %6 = vector.broadcast %cst_3 : f32 to vector<32x1xf32>
    %7 = arith.divf %5, %6 : vector<32x1xf32>
    %8 = vector.broadcast %7 : vector<32x1xf32> to vector<32x32xf32>
    %9 = arith.subf %1, %8 : vector<32x32xf32>
    %10 = arith.mulf %9, %9 : vector<32x32xf32>
    %cst_4 = arith.constant dense<0.000000e+00> : vector<32xf32>
    %11 = vector.multi_reduction <add>, %10, %cst_4 [1] : vector<32x32xf32> to vector<32xf32>
    %12 = vector.shape_cast %11 : vector<32xf32> to vector<32x1xf32>
    %cst_5 = arith.constant 3.200000e+01 : f32
    %13 = vector.broadcast %cst_5 : f32 to vector<32x1xf32>
    %14 = arith.divf %12, %13 : vector<32x1xf32>
    %15 = vector.broadcast %7 : vector<32x1xf32> to vector<32x32xf32>
    %16 = arith.subf %1, %15 : vector<32x32xf32>
    %cst_6 = arith.constant 9.99999996E-13 : f32
    %17 = vector.broadcast %cst_6 : f32 to vector<32x1xf32>
    %18 = arith.addf %14, %17 : vector<32x1xf32>
    %19 = math.rsqrt %18 : vector<32x1xf32>
    %20 = vector.broadcast %19 : vector<32x1xf32> to vector<32x32xf32>
    %21 = arith.mulf %16, %20 : vector<32x32xf32>
    %22 = vector.broadcast %2 : vector<1x32xf32> to vector<32x32xf32>
    %23 = arith.mulf %21, %22 : vector<32x32xf32>
    %24 = vector.broadcast %3 : vector<1x32xf32> to vector<32x32xf32>
    %25 = arith.addf %23, %24 : vector<32x32xf32>
    %26 = arith.truncf %25 : vector<32x32xf32> to vector<32x32xbf16>
    %c0_7 = arith.constant 0 : index
    %c0_8 = arith.constant 0 : index
    %27 = vector.load %arg3[%c0_7, %c0_8] : memref<32x32xbf16, #tpu.memory_space<vmem>>, vector<32x32xbf16>
    tpu.vector_store %arg3[%c0_7, %c0_8], %26 {strides = array<i32>} : memref<32x32xbf16, #tpu.memory_space<vmem>>, vector<32x32xbf16>,
    return
  }
  func.func @transform_0(%arg0: i32) -> (i32, i32) {
    %c0_i32 = arith.constant 0 : i32
    %c0_i32_0 = arith.constant 0 : i32
    return %arg0, %c0_i32 : i32, i32
  }
  func.func @transform_1(%arg0: i32) -> (i32, i32) {
    %c0_i32 = arith.constant 0 : i32
    %c0_i32_0 = arith.constant 0 : i32
    %c0_i32_1 = arith.constant 0 : i32
    return %c0_i32, %c0_i32_0 : i32, i32
  }
  func.func @transform_2(%arg0: i32) -> (i32, i32) {
    %c0_i32 = arith.constant 0 : i32
    %c0_i32_0 = arith.constant 0 : i32
    return %arg0, %c0_i32 : i32, i32
  }
}

</mosaic_0001>

<bundles_post_ra>
// kernel: tpu_custom_call.1
= control target key start
LH: loop header
LB: loop body
LE: loop exit
PB: predicated region body
PF: predicated region fallthrough
CT: control target
= control target key end

     0   :  { %6 = vsyncpa [#allocation3], 0  ;;  %s440_s0 = inlined_call_operand.hbm [shape: f32[8,128], index: 0, kind: input, shape index: {}]   ;;  %s441_s1 = inlined_call_operand.hbm [shape: f32[16,128], index: 1, kind: output, shape index: {}]  }
   0x1   :  { %7 = vsyncpa [#allocation4], 0 }
   0x2   :  { %9 = vsyncpa [#allocation4 + $0x1], 0  ;;  %s356_s6 = smov 0   ;;  %s358_s7 = smov 0  }
   0x3   :  { %s360_s8 = smov 0   ;;  %s362_s9 = smov 0  }
   0x4 LB: > { %s377_s10 = sadd.s32 4294967295, %s343_s9   ;;  %s187_s11 = sadd.s32 4294967294, %s343_s9   ;;  %s343_s9 = sphi %s362_s9, %s447_s9   ;;  %s339_s8 = sphi %s360_s8, %s446_s8   ;;  %s335_s7 = sphi %s358_s7, %s445_s7   ;;  %s331_s6 = sphi %s356_s6, %s444_s6  }
   0x5   : > { %s381_s12 = sadd.s32 1, %s343_s9   ;;  %s43_s13 = sadd.s32 1, %s339_s8 }
   0x6   : > { %s40_s14 = ssub.s32 %s343_s9, %s381_s12  ;;  %p53_p0 = scmp.ne.s32.totalorder %s339_s8, %s335_s7 }
   0x7   : > { %p41_p1 = scmp.eq.s32.totalorder %s40_s14, 0  ;;  %p54_p2 = scmp.eq.s32.totalorder %s377_s10, 1 }
   0x8   : > { %p59_p3 = scmp.ne.s32.totalorder %s335_s7, %s331_s6  ;;  %p60_p4 = scmp.eq.s32.totalorder %s187_s11, 1 }
   0x9   : > { %s392_s15 = scalar_select %p41_p1, %s339_s8, %s43_s13  }
   0xa   : > { %p394_p5 = por %p54_p2, %p53_p0  ;;  %p398_p6 = por %p60_p4, %p59_p3 }
   0xb   : > { %p188_p7 = scmp.ge.s32.totalorder %s343_s9, 1  ;;  %p67_p8 = scmp.lt.s32.totalorder %s343_s9, 3 }
   0xc   : > { %p211_p9 = scmp.eq.s32.totalorder %s377_s10, 0  ;;  %s79_s20 = sshll.u32 %s440_s0, 4  ;;  %s80_s20 = int_to_ptr.hbm [resolvable:$true] %s79_s20 }
   0xd   : > { %p68_p10 = pnand %p188_p7, %p67_p8  ;;  %s345_s21 = smov [#allocation2]  }
   0xe   : > { %s81_s22 = sshll.u32 %s345_s21, 4  ;;  %s82_s22 = int_to_ptr.vmem [resolvable:$true] %s81_s22 }
   0xf   : > { %p203_p11 = pneg %p68_p10  ;;  %94 = sbr.rel (%p68_p10) target bundleno = 37 (0x25), region = 24 }
  0x11   : > { %p204_p12 = pnand %p211_p9, %p203_p11 }
  0x13   : > { %206 = dma.hbm_to_vmem [thread:$0]  (!%p204_p12), %s80_s20, 128, %s82_s22, [#allocation3]  }
  0x14   : > { %322 = dma.done.wait (%p211_p9), [#allocation3], 128  }
  0x15   : > { %324 = vsyncadd (%p211_p9), [#allocation3], 4294967168  ;;  %s107_s23 = sand.u32 1, %s335_s7   ;;  %s194_s24 = sshll.u32 %s377_s10, 3  ;;  %v110_v0 = vld [vmem:[#allocation2] sm:$0xff] }
  0x16   : > { %s192_s25 = sshll.u32 %s107_s23, 3  ;;  %s123_s28 = scalar_lea.hbm %s441_s1, %s194_s24 }
  0x17   : > { %s109_s29 = scalar_lea.vmem [#allocation5], %s192_s25  ;;  %s127_s2 = sshll.u32 %s123_s28, 4  ;;  %s128_s2 = int_to_ptr.hbm [resolvable:$true] %s127_s2 }
  0x18   : > { %s125_s30 = sshll.u32 %s109_s29, 4  ;;  %111 = vst [vmem:[%s109_s29] sm:$0xff] %v110_v0  ;;  %s113_s3 = scalar_lea.sflag [#allocation4], %s107_s23  ;;  %s126_s30 = int_to_ptr.vmem [resolvable:$true] %s125_s30 }
  0x19   : > { %s291_s4 = sshra.s32 %s128_s2, 4  ;;  %s297_s13 = scalar_lea.hbm %s441_s1, 16  ;;  %s292_s4 = int_to_ptr.hbm [resolvable:$true] %s291_s4 }
  0x1a   : > { %s293_s5 = scalar_lea.hbm %s292_s4, 8  ;;  %p298_p2 = scmp.lt.s32.totalorder %s292_s4, %s441_s1 }
  0x1b   : > { %p294_p13 = scmp.ne.s32.totalorder %s292_s4, %s293_s5  ;;  %p299_p3 = scmp.lt.s32.totalorder %s297_s13, %s293_s5 }
  0x1d   : > { %p295_p0 = pnand %p294_p13, %p394_p5  ;;  %p300_p4 = por %p299_p3, %p298_p2 }
  0x1f   : > { %p296_p1 = pneg %p295_p0 }
  0x21   : > { %p301_p7 = pnand %p300_p4, %p296_p1 }
  0x23   : > { %304 = shalt.err (!%p301_p7)
}
  0x24   : > { %201 = dma.vmem_to_hbm [thread:$0]  (%p394_p5), %s126_s30, 128, %s128_s2, %s113_s3  }
  0x25 PF: > { %p213_p8 = scmp.ge.s32.totalorder %s343_s9, 2  ;;  %s139_s19 = sand.u32 1, %s331_s6  }
  0x26   : > { %s140_s20 = scalar_lea.sflag [#allocation4], %s139_s19 }
  0x27   : > { %p208_p9 = pnand %p213_p8, %p398_p6 }
  0x29   : > { %p209_p10 = pneg %p208_p9 }
  0x2b   : > { %326 = dma.done.wait (%p209_p10), %s140_s20, 128  }
  0x2c   : > { %328 = vsyncadd (%p209_p10), %s140_s20, 4294967168  ;;  %p12_p11 = scmp.ge.s32.totalorder %s381_s12, 4   ;;  %s444_s6 = smov %s335_s7 }
  0x2d   : > { %s445_s7 = smov %s339_s8  ;;  %s446_s8 = smov %s392_s15 }
  0x2e   : > { %s447_s9 = smov %s381_s12  ;;  %14 = sbr.rel (!%p12_p11) target bundleno = 4 (0x4), region = 61 }
  0x33   :  { %146 = vsyncpa [#allocation3], 1 }
  0x34   :  { %148 = vsyncpa [#allocation3 + $0x1], 1 }
  0x35   :  { %149 = vsyncpa [#allocation4], 1 }
  0x36   :  { %151 = vsyncpa [#allocation4 + $0x1], 1 }

// kernel: tpu_custom_call.1
= control target key start
LH: loop header
LB: loop body
LE: loop exit
PB: predicated region body
PF: predicated region fallthrough
CT: control target
= control target key end

     0   :  { %7 = vsyncpa [#allocation3], 0  ;;  %s337_s0 = inlined_call_operand.hbm [shape: f32[32,32], index: 0, kind: input, shape index: {}]   ;;  %s338_s1 = inlined_call_operand.hbm [shape: f32[2,32], index: 1, kind: input, shape index: {}]   ;;  %s339_s2 = inlined_call_operand.hbm [shape: bf16[32,32], index: 2, kind: output, shape index: {}]  }
   0x1   :  { %8 = vsyncpa [#allocation6], 0 }
   0x2   :  { %9 = vsyncpa [#allocation4], 0  ;;  %s14_s11 = sshll.u32 %s337_s0, 4  ;;  %s278_s12 = smov [#allocation2]   ;;  %s15_s11 = int_to_ptr.hbm [resolvable:$true] %s14_s11 }
   0x3   :  { %s16_s13 = sshll.u32 %s278_s12, 4  ;;  %s28_s16 = sshll.u32 %s338_s1, 4  ;;  %s17_s13 = int_to_ptr.vmem [resolvable:$true] %s16_s13  ;;  %s29_s16 = int_to_ptr.hbm [resolvable:$true] %s28_s16 }
   0x4   :  { %s279_s17 = smov 128   ;;  %s280_s18 = smov 8  }
   0x5   :  { %22 = dma.hbm_to_vmem [thread:$0]  %s15_s11, 512, %s17_s13, [#allocation3], %s279_s17, %s279_s17, %s280_s18  }
   0x6   :  { %s281_s19 = smov [#allocation5]  }
   0x7   :  { %s30_s20 = sshll.u32 %s281_s19, 4  ;;  %s31_s20 = int_to_ptr.vmem [resolvable:$true] %s30_s20 }
   0x8   :  { %33 = dma.hbm_to_vmem [thread:$0]  %s29_s16, 32, %s31_s20, [#allocation6]  }
   0x9   :  { %272 = dma.done.wait [#allocation3], 512  }
   0xa   :  { %273 = vsyncadd [#allocation3], 4294966784 }
   0xb   :  { %274 = dma.done.wait [#allocation6], 32  }
   0xc   :  { %275 = vsyncadd [#allocation6], 4294967264  ;;  %vm47_vm0 = vcmask 261120   ;;  %v45_v0 = vld [vmem:[#allocation2 + $0x10] sm:$0xff]  ;;  %v43_v1 = vld [vmem:[#allocation2] sm:$0xff]  ;;  %v282_v8 = vmov 32.0  }
   0xd   :  { %v54_v2 = vsel %vm47_vm0, %v45_v0, 0.0  ;;  %v48_v3 = vsel %vm47_vm0, %v43_v1, 0.0  ;;  %v46_v4 = vld [vmem:[#allocation2 + $0x18] sm:$0xff]  ;;  %v44_v5 = vld [vmem:[#allocation2 + $0x8] sm:$0xff]  ;;  %190 = vrcp.f32 %v282_v8  ;;  %v42_v55 = vld [vmem:[#allocation5] sm:$0x3] }
   0xe   :  { %55 = vadd.xlane.f32.xlu1 %v54_v2  ;;  %49 = vadd.xlane.f32.xlu0 %v48_v3  ;;  %v57_v6 = vsel %vm47_vm0, %v46_v4, 0.0  ;;  %v51_v7 = vsel %vm47_vm0, %v44_v5, 0.0  ;;  %v143_v62 = vperm.slane %v42_v55, 0  ;;  %vm157_vm10 = vcmask 257024   ;;  %s283_s0 = smov [#allocation7]   ;;  %s168_s23 = sshll.u32 %s339_s2, 4  ;;  %s169_s23 = int_to_ptr.hbm [resolvable:$true] %s168_s23 }
   0xf   :  { %s166_s1 = sshll.u32 %s283_s0, 4  ;;  %s284_s24 = smov 64   ;;  %s167_s1 = int_to_ptr.vmem [resolvable:$true] %s166_s1 }
  0x10   :  { %s285_s25 = smov 4  }
  0x13   :  { %v191_v9 = vpop.eup %190 }
  0x14   :  { %v61_v10 = vmul.f32 32.0, %v191_v9  ;;  %vm65_vm1 = vweird.f32 %v191_v9 }
  0x16   :  { %58 = vadd.xlane.f32.xlu1 %v57_v6  ;;  %52 = vadd.xlane.f32.xlu0 %v51_v7  ;;  %v62_v11 = vsub.f32 1.0, %v61_v10 }
  0x18   :  { %v63_v12 = vmul.f32 %v191_v9, %v62_v11 }
  0x1a   :  { %v64_v13 = vadd.f32 %v191_v9, %v63_v12 }
  0x1c   :  { %v66_v14 = vsel %vm65_vm1, %v191_v9, %v64_v13 }
  0x81   :  { %v56_v15 = vpop.xlane.xlu1 %55  ;;  %v50_v16 = vpop.xlane.xlu0 %49 }
  0x82   :  { %v69_v17 = vmul.f32 %v66_v14, %v56_v15  ;;  %v67_v18 = vmul.f32 %v66_v14, %v50_v16 }
  0x84   :  { %v311_v19 = vsub.f32 %v45_v0, %v69_v17  ;;  %v71_v20 = vsub.f32 %v43_v1, %v67_v18 }
  0x86   :  { %v77_v21 = vmul.f32 %v311_v19, %v311_v19  ;;  %v75_v22 = vmul.f32 %v71_v20, %v71_v20 }
  0x88   :  { %v85_v23 = vsel %vm47_vm0, %v77_v21, 0.0  ;;  %v79_v24 = vsel %vm47_vm0, %v75_v22, 0.0 }
  0x89   :  { %v59_v25 = vpop.xlane.xlu1 %58  ;;  %86 = vadd.xlane.f32.xlu0 %v85_v23  ;;  %80 = vadd.xlane.f32.xlu2 %v79_v24  ;;  %v53_v26 = vpop.xlane.xlu0 %52 }
  0x8a   :  { %v70_v27 = vmul.f32 %v66_v14, %v59_v25  ;;  %v68_v28 = vmul.f32 %v66_v14, %v53_v26 }
  0x8c   :  { %v317_v29 = vsub.f32 %v46_v4, %v70_v27  ;;  %v319_v30 = vsub.f32 %v44_v5, %v68_v28  ;;  %v148_v4 = vperm.slane %v42_v55, 1 }
  0x8e   :  { %v78_v31 = vmul.f32 %v317_v29, %v317_v29  ;;  %v76_v32 = vmul.f32 %v319_v30, %v319_v30 }
  0x90   :  { %v88_v33 = vsel %vm47_vm0, %v78_v31, 0.0  ;;  %v82_v34 = vsel %vm47_vm0, %v76_v32, 0.0 }
  0x91   :  { %89 = vadd.xlane.f32.xlu1 %v88_v33  ;;  %83 = vadd.xlane.f32.xlu2 %v82_v34 }
  0xfc   :  { %v81_v35 = vpop.xlane.xlu2 %80  ;;  %v87_v36 = vpop.xlane.xlu0 %86 }
  0xfd   :  { %v91_v37 = vmul.f32 %v81_v35, %v66_v14  ;;  %v93_v38 = vmul.f32 %v87_v36, %v66_v14 }
  0xff   :  { %v95_v39 = vadd.f32 1e-12, %v91_v37  ;;  %v97_v40 = vadd.f32 1e-12, %v93_v38 }
 0x101   :  { %192 = vrsqrt.f32 %v95_v39  ;;  %vm105_vm4 = vweird.f32 %v95_v39  ;;  %vm125_vm6 = vweird.f32 %v97_v40 }
 0x102   :  { %194 = vrsqrt.f32 %v97_v40 }
 0x104   :  { %v90_v41 = vpop.xlane.xlu1 %89  ;;  %v84_v42 = vpop.xlane.xlu2 %83 }
 0x105   :  { %v94_v43 = vmul.f32 %v90_v41, %v66_v14  ;;  %v92_v44 = vmul.f32 %v84_v42, %v66_v14 }
 0x107   :  { %v193_v45 = vpop.eup %192  ;;  %v98_v46 = vadd.f32 1e-12, %v94_v43  ;;  %v96_v47 = vadd.f32 1e-12, %v92_v44 }
 0x108   :  { %v195_v48 = vpop.eup %194  ;;  %v100_v49 = vmul.f32 %v193_v45, %v95_v39  ;;  %vm106_vm2 = vweird.f32 %v193_v45 }
 0x109   :  { %v120_v50 = vmul.f32 %v195_v48, %v97_v40  ;;  %196 = vrsqrt.f32 %v98_v46  ;;  %vm126_vm3 = vweird.f32 %v195_v48  ;;  %vm107_vm5 = vmor %vm105_vm4, %vm106_vm2  ;;  %vm135_vm11 = vweird.f32 %v98_v46 }
 0x10a   :  { %v101_v51 = vmul.f32 %v193_v45, %v100_v49  ;;  %198 = vrsqrt.f32 %v96_v47  ;;  %vm127_vm7 = vmor %vm125_vm6, %vm126_vm3  ;;  %vm115_vm13 = vweird.f32 %v96_v47 }
 0x10b   :  { %v121_v52 = vmul.f32 %v195_v48, %v120_v50 }
 0x10c   :  { %v102_v53 = vmul.f32 0.5, %v101_v51 }
 0x10d   :  { %v122_v54 = vmul.f32 0.5, %v121_v52 }
 0x10e   :  { %v103_v56 = vsub.f32 1.5, %v102_v53 }
 0x10f   :  { %v197_v57 = vpop.eup %196  ;;  %v123_v58 = vsub.f32 1.5, %v122_v54 }
 0x110   :  { %v199_v59 = vpop.eup %198  ;;  %v104_v60 = vmul.f32 %v193_v45, %v103_v56  ;;  %v130_v61 = vmul.f32 %v197_v57, %v98_v46  ;;  %vm136_vm8 = vweird.f32 %v197_v57 }
 0x111   :  { %v124_v63 = vmul.f32 %v195_v48, %v123_v58  ;;  %v110_v0 = vmul.f32 %v199_v59, %v96_v47  ;;  %vm116_vm9 = vweird.f32 %v199_v59  ;;  %vm137_vm12 = vmor %vm135_vm11, %vm136_vm8 }
 0x112   :  { %v108_v1 = vsel %vm107_vm5, %v193_v45, %v104_v60  ;;  %v131_v2 = vmul.f32 %v197_v57, %v130_v61  ;;  %vm117_vm14 = vmor %vm115_vm13, %vm116_vm9 }
 0x113   :  { %v139_v3 = vmul.f32 %v108_v1, %v71_v20  ;;  %v128_v5 = vsel %vm127_vm7, %v195_v48, %v124_v63  ;;  %v111_v6 = vmul.f32 %v199_v59, %v110_v0 }
 0x114   :  { %v141_v7 = vmul.f32 %v128_v5, %v311_v19  ;;  %v132_v8 = vmul.f32 0.5, %v131_v2 }
 0x115   :  { %v144_v9 = vmul.f32 %v143_v62, %v139_v3  ;;  %v112_v10 = vmul.f32 0.5, %v111_v6 }
 0x116   :  { %v146_v11 = vmul.f32 %v143_v62, %v141_v7  ;;  %v133_v12 = vsub.f32 1.5, %v132_v8 }
 0x117   :  { %v149_v13 = vadd.f32 %v148_v4, %v144_v9  ;;  %v113_v14 = vsub.f32 1.5, %v112_v10 }
 0x118   :  { %v151_v15 = vadd.f32 %v148_v4, %v146_v11  ;;  %v134_v16 = vmul.f32 %v197_v57, %v133_v12 }
 0x119   :  { %v153_v17 = vpack.c.bf16 %v149_v13, %v149_v13  ;;  %v114_v18 = vmul.f32 %v199_v59, %v113_v14 }
 0x11a   :  { %v155_v20 = vpack.c.bf16 %v151_v15, %v151_v15  ;;  %v138_v21 = vsel %vm137_vm12, %v197_v57, %v134_v16 }
 0x11b   :  { %158 = vst.msk [vmem:[#allocation7] sm:$0xf] %vm157_vm10, %v153_v17  ;;  %v142_v19 = vmul.f32 %v138_v21, %v317_v29  ;;  %v118_v22 = vsel %vm117_vm14, %v199_v59, %v114_v18 }
 0x11c   :  { %160 = vst.msk [vmem:[#allocation7 + $0x8] sm:$0xf] %vm157_vm10, %v155_v20  ;;  %v140_v23 = vmul.f32 %v118_v22, %v319_v30 }
 0x11d   :  { %v147_v24 = vmul.f32 %v143_v62, %v142_v19 }
 0x11e   :  { %v145_v25 = vmul.f32 %v143_v62, %v140_v23 }
 0x11f   :  { %v152_v26 = vadd.f32 %v148_v4, %v147_v24 }
 0x120   :  { %v150_v27 = vadd.f32 %v148_v4, %v145_v25 }
 0x121   :  { %v156_v28 = vpack.c.bf16 %v152_v26, %v152_v26 }
 0x122   :  { %v154_v31 = vpack.c.bf16 %v150_v27, %v150_v27 }
 0x123   :  { %161 = vst.msk [vmem:[#allocation7 + $0xc] sm:$0xf] %vm157_vm10, %v156_v28 }
 0x124   :  { %159 = vst.msk [vmem:[#allocation7 + $0x4] sm:$0xf] %vm157_vm10, %v154_v31 }
 0x125   :  { %174 = dma.vmem_to_hbm [thread:$0]  %s167_s1, 256, %s169_s23, [#allocation4], %s284_s24, %s284_s24, %s285_s25  }
 0x126   :  { %276 = dma.done.wait [#allocation4], 256  }
 0x127   :  { %277 = vsyncadd [#allocation4], 4294967040 }
 0x128   :  { %179 = vsyncpa [#allocation3], 1 }
 0x129   :  { %180 = vsyncpa [#allocation6], 1 }
 0x12a   :  { %181 = vsyncpa [#allocation4], 1 }

</bundles_post_ra>
